<compile_context>
chip_gen: v7x
topology: tpu7x:2x2x1
jax: 0.10.0
libtpu: 0.0.40
codegen_flags: <defaults>
</compile_context>

<pallas_src>
import jax
import jax.numpy as jnp
from jax.experimental import pallas as pl
from jax.experimental.pallas import tpu as pltpu

BN_EPS = 1e-5


def _round_up(x, m):
    return ((x + m - 1) // m) * m


def _device_kind():
    try:
        return jax.devices()[0].device_kind.lower()
    except Exception:
        return ""


def _tensorcores_per_chip(kind):
    # Chips where one grid is sharded across 2 TensorCores (v7x, megacore).
    return 2 if any(t in kind for t in ("v7", "v4", "v5p")) else 1


def _default_compute_dtype(kind):
    # bf16-native MXUs: bf16 operands, f32 MXU accumulation.
    if any(t in kind for t in ("v6", "v7", "trillium")):
        return jnp.bfloat16
    return jnp.float32


def _choose_row_tile(N, n_cores, max_tile):
    """Row-tile heuristic.  Single-TC chips: one max-size tile (no forced
    split); 2-TC chips: aim for an even number (>= n_cores) of grid steps."""
    if n_cores <= 1:
        if N <= max_tile:
            return N                      # full-extent tile: no row padding
        return max(8, (max_tile // 8) * 8)
    tile = min(max_tile, _round_up(N, 8))
    tile = max(8, (tile // 8) * 8)
    steps = -(-N // tile)
    if steps % n_cores:
        steps = _round_up(steps, n_cores)
        tile = max(8, _round_up(-(-N // steps), 8))
    return tile


def residual_block_kernel(x_ref, w1_ref, w2_ref, b_ref, o_ref):
    """Fused fc1(+BN1 folded) -> ReLU -> [dropout=id] -> fc2(+BN2 folded) -> +x -> ReLU."""
    x = x_ref[...]
    identity = x.astype(jnp.float32)          # residual path stays f32
    b1 = b_ref[0:1, :]                        # (1, C) f32, broadcasts over rows
    b2 = b_ref[1:2, :]

    # fc1 (+ folded bn1): cast the matmul operand only (identity untouched).
    h = jnp.dot(x.astype(w1_ref.dtype), w1_ref[...],
                preferred_element_type=jnp.float32) + b1
    h = jnp.maximum(h, 0.0)                   # ReLU
    # Dropout: identity in eval mode.
    # fc2 (+ folded bn2)
    h = jnp.dot(h.astype(w2_ref.dtype), w2_ref[...],
                preferred_element_type=jnp.float32) + b2
    # residual add + ReLU, kept in f32
    h = jnp.maximum(h + identity, 0.0)
    o_ref[...] = h.astype(o_ref.dtype)


def residual_block(x, params, *, tile_n=None, compute_dtype=None,
                   out_dtype=None, single_buffer_weights=True):
    """x: (N, C).  params: dict of fc/bn parameters (PyTorch layout)."""
    N, C = x.shape
    kind = _device_kind()
    n_cores = _tensorcores_per_chip(kind)
    if compute_dtype is None:
        compute_dtype = _default_compute_dtype(kind)
    if out_dtype is None:
        out_dtype = x.dtype
    if tile_n is None:
        tile_n = 512 if n_cores > 1 else 1024

    # ---- fold eval-mode BatchNorm into the linear layers (loop-invariant) ----
    scale1 = params["g1"] * jax.lax.rsqrt(params["v1"] + BN_EPS)
    scale2 = params["g2"] * jax.lax.rsqrt(params["v2"] + BN_EPS)
    w1 = (params["w1"].T * scale1[None, :]).astype(compute_dtype)   # (C_in, C_out)
    b1 = (params["b1"] - params["m1"]) * scale1 + params["be1"]
    w2 = (params["w2"].T * scale2[None, :]).astype(compute_dtype)
    b2 = (params["b2"] - params["m2"]) * scale2 + params["be2"]
    bias = jnp.stack([b1, b2], axis=0).astype(jnp.float32)          # (2, C) packed slab

    # ---- row tiling: avoid padding whenever possible ----
    tn = _choose_row_tile(N, n_cores, tile_n)
    N_pad = _round_up(N, tn)
    x_p = x if N_pad == N else jnp.pad(x, ((0, N_pad - N), (0, 0)))
    grid = (N_pad // tn,)

    # ---- VMEM budget + cost estimate ----
    isz = lambda d: jnp.dtype(d).itemsize
    w_bufs = 1 if single_buffer_weights else 2
    est = (2 * C * C * isz(compute_dtype) * w_bufs     # w1 + w2 (resident)
           + 2 * C * 4 * w_bufs                        # bias slab
           + 2 * tn * C * isz(x.dtype)                 # double-buffered input tile
           + 2 * tn * C * isz(out_dtype))              # double-buffered output tile
    vmem_limit = int(min(100 * 2**20, max(32 * 2**20, int(est * 1.5))))
    cost = pl.CostEstimate(
        flops=4 * N_pad * C * C, transcendentals=0,
        bytes_accessed=(N_pad * C * isz(x.dtype) + 2 * C * C * isz(compute_dtype)
                        + 2 * C * 4 + N_pad * C * isz(out_dtype)))

    act_in_spec = pl.BlockSpec((tn, C), lambda i: (i, 0))
    act_out_spec = pl.BlockSpec((tn, C), lambda i: (i, 0))

    def _call(single_buffer):
        kw = {"pipeline_mode": pl.Buffered(1)} if single_buffer else {}
        mat_spec = pl.BlockSpec((C, C), lambda i: (0, 0), **kw)   # resident weights
        vec_spec = pl.BlockSpec((2, C), lambda i: (0, 0), **kw)   # resident biases
        return pl.pallas_call(
            residual_block_kernel,
            out_shape=jax.ShapeDtypeStruct((N_pad, C), out_dtype),
            grid_spec=pltpu.PrefetchScalarGridSpec(
                num_scalar_prefetch=0,
                grid=grid,
                in_specs=[act_in_spec, mat_spec, mat_spec, vec_spec],
                out_specs=act_out_spec),
            compiler_params=pltpu.CompilerParams(
                dimension_semantics=("parallel",),
                vmem_limit_bytes=vmem_limit),
            cost_estimate=cost,
        )(x_p, w1, w2, bias)

    if single_buffer_weights:
        try:
            out = _call(True)
        except Exception:
            # Fallback for JAX versions that reject Buffered(buffer_count=1).
            out = _call(False)
    else:
        out = _call(False)

    return out if N_pad == N else out[:N]


def init_params(key, channels):
    """Deterministic init mimicking PyTorch defaults (uniform +-1/sqrt(C))."""
    k1, k2, k3, k4 = jax.random.split(key, 4)
    bound = 1.0 / jnp.sqrt(channels)
    return {
        "w1": jax.random.uniform(k1, (channels, channels), jnp.float32, -bound, bound),
        "b1": jax.random.uniform(k2, (channels,), jnp.float32, -bound, bound),
        "w2": jax.random.uniform(k3, (channels, channels), jnp.float32, -bound, bound),
        "b2": jax.random.uniform(k4, (channels,), jnp.float32, -bound, bound),
        # BatchNorm1d defaults: gamma=1, beta=0, running_mean=0, running_var=1
        "g1": jnp.ones((channels,), jnp.float32),
        "be1": jnp.zeros((channels,), jnp.float32),
        "m1": jnp.zeros((channels,), jnp.float32),
        "v1": jnp.ones((channels,), jnp.float32),
        "g2": jnp.ones((channels,), jnp.float32),
        "be2": jnp.zeros((channels,), jnp.float32),
        "m2": jnp.zeros((channels,), jnp.float32),
        "v2": jnp.ones((channels,), jnp.float32),
    }


def reference_forward(x, p):
    """Pure-JAX reference (eval-mode PyTorch semantics), full-precision matmuls."""
    hp = jax.lax.Precision.HIGHEST
    h = jnp.dot(x, p["w1"].T, precision=hp) + p["b1"]
    h = (h - p["m1"]) / jnp.sqrt(p["v1"] + BN_EPS) * p["g1"] + p["be1"]
    h = jnp.maximum(h, 0.0)
    h = jnp.dot(h, p["w2"].T, precision=hp) + p["b2"]
    h = (h - p["m2"]) / jnp.sqrt(p["v2"] + BN_EPS) * p["g2"] + p["be2"]
    return jnp.maximum(h + x, 0.0)


if __name__ == "__main__":
    key = jax.random.PRNGKey(0)
    kx, kp, kx2, kp2 = jax.random.split(key, 4)

    # Small shape consistent with the module: batch 64, channels 32.
    # Exercises the "no padding at all" path (full-extent blocks, masked vst).
    N, C = 64, 32
    x = jax.random.normal(kx, (N, C), dtype=jnp.float32)
    params = init_params(kp, C)
    ref = reference_forward(x, params)

    # f32 compute path.  Tolerance covers backend-default f32-matmul handling
    # on bf16-native MXUs (single vs multi-pass); values are O(1).
    out = jax.block_until_ready(residual_block(x, params, compute_dtype=jnp.float32))
    assert out.shape == (N, C)
    assert jnp.allclose(out, ref, atol=2e-2, rtol=2e-2), (
        f"f32 max abs err = {jnp.max(jnp.abs(out - ref))}")

    # bf16 MXU path (default on v6e/v7x): bf16 operands, f32 accumulation,
    # f32 residual-add / ReLU / output.
    out_bf16 = jax.block_until_ready(
        residual_block(x, params, compute_dtype=jnp.bfloat16))
    assert out_bf16.shape == (N, C)
    assert jnp.allclose(out_bf16, ref, atol=1e-1, rtol=5e-2), (
        f"bf16 max abs err = {jnp.max(jnp.abs(out_bf16 - ref))}")

    # Lane-dense shape (C multiple of 128) with a multi-step grid.
    N2, C2 = 256, 128
    x2 = jax.random.normal(kx2, (N2, C2), dtype=jnp.float32)
    params2 = init_params(kp2, C2)
    ref2 = reference_forward(x2, params2)
    out2 = jax.block_until_ready(
        residual_block(x2, params2, compute_dtype=jnp.float32, tile_n=128))
    assert out2.shape == (N2, C2)
    assert jnp.allclose(out2, ref2, atol=2e-2, rtol=2e-2), (
        f"multi-step max abs err = {jnp.max(jnp.abs(out2 - ref2))}")

    print("KERNEL_OK")
</pallas_src>

<mosaic_0001>
module attributes {stable_mosaic.version = 11 : i64} {
  func.func @residual_block_kernel(%arg0: i32, %arg1: memref<64x32xf32, #tpu.memory_space<vmem>>, %arg2: memref<32x32xf32, #tpu.memory_space<vmem>>, %arg3: memref<32x32xf32, #tpu.memory_space<vmem>>, %arg4: memref<2x32xf32, #tpu.memory_space<vmem>>, %arg5: memref<64x32xf32, #tpu.memory_space<vmem>>) attributes {dimension_semantics = [#tpu.dimension_semantics<parallel>], iteration_bounds = array<i64: 1>, scalar_prefetch = 0 : i64, scratch_operands = 0 : i64, tpu.core_type = #tpu.core_type<tc>, window_params = [{transform_indices = @transform_0, window_bounds = array<i64: 64, 32>}, {pipeline_mode = #tpu.pipeline_mode<synchronous>, transform_indices = @transform_1, window_bounds = array<i64: 32, 32>}, {pipeline_mode = #tpu.pipeline_mode<synchronous>, transform_indices = @transform_2, window_bounds = array<i64: 32, 32>}, {pipeline_mode = #tpu.pipeline_mode<synchronous>, transform_indices = @transform_3, window_bounds = array<i64: 2, 32>}, {transform_indices = @transform_4, window_bounds = array<i64: 64, 32>}]} {
    %c0 = arith.constant 0 : index
    %c0_0 = arith.constant 0 : index
    %0 = vector.load %arg1[%c0, %c0_0] : memref<64x32xf32, #tpu.memory_space<vmem>>, vector<64x32xf32>
    %c0_1 = arith.constant 0 : index
    %c0_2 = arith.constant 0 : index
    %1 = vector.load %arg4[%c0_1, %c0_2] : memref<2x32xf32, #tpu.memory_space<vmem>>, vector<1x32xf32>
    %c1 = arith.constant 1 : index
    %c0_3 = arith.constant 0 : index
    %2 = vector.load %arg4[%c1, %c0_3] : memref<2x32xf32, #tpu.memory_space<vmem>>, vector<1x32xf32>
    %c0_4 = arith.constant 0 : index
    %c0_5 = arith.constant 0 : index
    %3 = vector.load %arg2[%c0_4, %c0_5] : memref<32x32xf32, #tpu.memory_space<vmem>>, vector<32x32xf32>
    %cst = arith.constant dense<0.000000e+00> : vector<64x32xf32>
    %4 = tpu.matmul %0, %3, %cst {dimension_numbers = #tpu.dot_dimension_numbers<[1], [0], [0], [1], [0, 0, 1, 1], [], []>} : vector<64x32xf32>, vector<32x32xf32>, vector<64x32xf32> -> vector<64x32xf32>
    %5 = vector.broadcast %1 : vector<1x32xf32> to vector<64x32xf32>
    %6 = arith.addf %4, %5 : vector<64x32xf32>
    %cst_6 = arith.constant 0.000000e+00 : f32
    %7 = vector.broadcast %cst_6 : f32 to vector<64x32xf32>
    %8 = arith.maximumf %6, %7 : vector<64x32xf32>
    %c0_7 = arith.constant 0 : index
    %c0_8 = arith.constant 0 : index
    %9 = vector.load %arg3[%c0_7, %c0_8] : memref<32x32xf32, #tpu.memory_space<vmem>>, vector<32x32xf32>
    %cst_9 = arith.constant dense<0.000000e+00> : vector<64x32xf32>
    %10 = tpu.matmul %8, %9, %cst_9 {dimension_numbers = #tpu.dot_dimension_numbers<[1], [0], [0], [1], [0, 0, 1, 1], [], []>} : vector<64x32xf32>, vector<32x32xf32>, vector<64x32xf32> -> vector<64x32xf32>
    %11 = vector.broadcast %2 : vector<1x32xf32> to vector<64x32xf32>
    %12 = arith.addf %10, %11 : vector<64x32xf32>
    %13 = arith.addf %12, %0 : vector<64x32xf32>
    %cst_10 = arith.constant 0.000000e+00 : f32
    %14 = vector.broadcast %cst_10 : f32 to vector<64x32xf32>
    %15 = arith.maximumf %13, %14 : vector<64x32xf32>
    %c0_11 = arith.constant 0 : index
    %c0_12 = arith.constant 0 : index
    %16 = vector.load %arg5[%c0_11, %c0_12] : memref<64x32xf32, #tpu.memory_space<vmem>>, vector<64x32xf32>
    tpu.vector_store %arg5[%c0_11, %c0_12], %15 {strides = array<i32>} : memref<64x32xf32, #tpu.memory_space<vmem>>, vector<64x32xf32>,
    return
  }
  func.func @transform_0(%arg0: i32) -> (i32, i32) {
    %c0_i32 = arith.constant 0 : i32
    %c0_i32_0 = arith.constant 0 : i32
    return %arg0, %c0_i32 : i32, i32
  }
  func.func @transform_1(%arg0: i32) -> (i32, i32) {
    %c0_i32 = arith.constant 0 : i32
    %c0_i32_0 = arith.constant 0 : i32
    %c0_i32_1 = arith.constant 0 : i32
    return %c0_i32, %c0_i32_0 : i32, i32
  }
  func.func @transform_2(%arg0: i32) -> (i32, i32) {
    %c0_i32 = arith.constant 0 : i32
    %c0_i32_0 = arith.constant 0 : i32
    %c0_i32_1 = arith.constant 0 : i32
    return %c0_i32, %c0_i32_0 : i32, i32
  }
  func.func @transform_3(%arg0: i32) -> (i32, i32) {
    %c0_i32 = arith.constant 0 : i32
    %c0_i32_0 = arith.constant 0 : i32
    %c0_i32_1 = arith.constant 0 : i32
    return %c0_i32, %c0_i32_0 : i32, i32
  }
  func.func @transform_4(%arg0: i32) -> (i32, i32) {
    %c0_i32 = arith.constant 0 : i32
    %c0_i32_0 = arith.constant 0 : i32
    return %arg0, %c0_i32 : i32, i32
  }
}

module attributes {stable_mosaic.version = 11 : i64} {
  func.func @residual_block_kernel(%arg0: i32, %arg1: memref<64x32xf32, #tpu.memory_space<vmem>>, %arg2: memref<32x32xf32, #tpu.memory_space<vmem>>, %arg3: memref<32x32xf32, #tpu.memory_space<vmem>>, %arg4: memref<2x32xf32, #tpu.memory_space<vmem>>, %arg5: memref<64x32xf32, #tpu.memory_space<vmem>>) attributes {dimension_semantics = [#tpu.dimension_semantics<parallel>], iteration_bounds = array<i64: 1>, scalar_prefetch = 0 : i64, scratch_operands = 0 : i64, tpu.core_type = #tpu.core_type<tc>, window_params = [{transform_indices = @transform_0, window_bounds = array<i64: 64, 32>}, {pipeline_mode = #tpu.pipeline_mode<synchronous>, transform_indices = @transform_1, window_bounds = array<i64: 32, 32>}, {pipeline_mode = #tpu.pipeline_mode<synchronous>, transform_indices = @transform_2, window_bounds = array<i64: 32, 32>}, {pipeline_mode = #tpu.pipeline_mode<synchronous>, transform_indices = @transform_3, window_bounds = array<i64: 2, 32>}, {transform_indices = @transform_4, window_bounds = array<i64: 64, 32>}]} {
    %c0 = arith.constant 0 : index
    %c0_0 = arith.constant 0 : index
    %0 = vector.load %arg1[%c0, %c0_0] : memref<64x32xf32, #tpu.memory_space<vmem>>, vector<64x32xf32>
    %c0_1 = arith.constant 0 : index
    %c0_2 = arith.constant 0 : index
    %1 = vector.load %arg4[%c0_1, %c0_2] : memref<2x32xf32, #tpu.memory_space<vmem>>, vector<1x32xf32>
    %c1 = arith.constant 1 : index
    %c0_3 = arith.constant 0 : index
    %2 = vector.load %arg4[%c1, %c0_3] : memref<2x32xf32, #tpu.memory_space<vmem>>, vector<1x32xf32>
    %c0_4 = arith.constant 0 : index
    %c0_5 = arith.constant 0 : index
    %3 = vector.load %arg2[%c0_4, %c0_5] : memref<32x32xf32, #tpu.memory_space<vmem>>, vector<32x32xf32>
    %cst = arith.constant dense<0.000000e+00> : vector<64x32xf32>
    %4 = tpu.matmul %0, %3, %cst {dimension_numbers = #tpu.dot_dimension_numbers<[1], [0], [0], [1], [0, 0, 1, 1], [], []>} : vector<64x32xf32>, vector<32x32xf32>, vector<64x32xf32> -> vector<64x32xf32>
    %5 = vector.broadcast %1 : vector<1x32xf32> to vector<64x32xf32>
    %6 = arith.addf %4, %5 : vector<64x32xf32>
    %cst_6 = arith.constant 0.000000e+00 : f32
    %7 = vector.broadcast %cst_6 : f32 to vector<64x32xf32>
    %8 = arith.maximumf %6, %7 : vector<64x32xf32>
    %c0_7 = arith.constant 0 : index
    %c0_8 = arith.constant 0 : index
    %9 = vector.load %arg3[%c0_7, %c0_8] : memref<32x32xf32, #tpu.memory_space<vmem>>, vector<32x32xf32>
    %cst_9 = arith.constant dense<0.000000e+00> : vector<64x32xf32>
    %10 = tpu.matmul %8, %9, %cst_9 {dimension_numbers = #tpu.dot_dimension_numbers<[1], [0], [0], [1], [0, 0, 1, 1], [], []>} : vector<64x32xf32>, vector<32x32xf32>, vector<64x32xf32> -> vector<64x32xf32>
    %11 = vector.broadcast %2 : vector<1x32xf32> to vector<64x32xf32>
    %12 = arith.addf %10, %11 : vector<64x32xf32>
    %13 = arith.addf %12, %0 : vector<64x32xf32>
    %cst_10 = arith.constant 0.000000e+00 : f32
    %14 = vector.broadcast %cst_10 : f32 to vector<64x32xf32>
    %15 = arith.maximumf %13, %14 : vector<64x32xf32>
    %c0_11 = arith.constant 0 : index
    %c0_12 = arith.constant 0 : index
    %16 = vector.load %arg5[%c0_11, %c0_12] : memref<64x32xf32, #tpu.memory_space<vmem>>, vector<64x32xf32>
    tpu.vector_store %arg5[%c0_11, %c0_12], %15 {strides = array<i32>} : memref<64x32xf32, #tpu.memory_space<vmem>>, vector<64x32xf32>,
    return
  }
  func.func @transform_0(%arg0: i32) -> (i32, i32) {
    %c0_i32 = arith.constant 0 : i32
    %c0_i32_0 = arith.constant 0 : i32
    return %arg0, %c0_i32 : i32, i32
  }
  func.func @transform_1(%arg0: i32) -> (i32, i32) {
    %c0_i32 = arith.constant 0 : i32
    %c0_i32_0 = arith.constant 0 : i32
    %c0_i32_1 = arith.constant 0 : i32
    return %c0_i32, %c0_i32_0 : i32, i32
  }
  func.func @transform_2(%arg0: i32) -> (i32, i32) {
    %c0_i32 = arith.constant 0 : i32
    %c0_i32_0 = arith.constant 0 : i32
    %c0_i32_1 = arith.constant 0 : i32
    return %c0_i32, %c0_i32_0 : i32, i32
  }
  func.func @transform_3(%arg0: i32) -> (i32, i32) {
    %c0_i32 = arith.constant 0 : i32
    %c0_i32_0 = arith.constant 0 : i32
    %c0_i32_1 = arith.constant 0 : i32
    return %c0_i32, %c0_i32_0 : i32, i32
  }
  func.func @transform_4(%arg0: i32) -> (i32, i32) {
    %c0_i32 = arith.constant 0 : i32
    %c0_i32_0 = arith.constant 0 : i32
    return %arg0, %c0_i32 : i32, i32
  }
}

</mosaic_0001>

<bundles_post_ra>
// kernel: tpu_custom_call.1
= control target key start
LH: loop header
LB: loop body
LE: loop exit
PB: predicated region body
PF: predicated region fallthrough
CT: control target
= control target key end

     0   :  { %vm35_vm0 = vcmask 261120   ;;  %s591_s1 = inlined_call_operand.vmem [shape: f32[32,32], index: 1, kind: input, shape index: {}]   ;;  %s592_s0 = inlined_call_operand.vmem [shape: f32[64,32], index: 0, kind: input, shape index: {}]   ;;  %s593_s2 = inlined_call_operand.vmem [shape: f32[32,32], index: 2, kind: input, shape index: {}]   ;;  %s594_s3 = inlined_call_operand.vmem [shape: f32[2,32], index: 3, kind: input, shape index: {}]   ;;  %s595_s4 = inlined_call_operand.vmem [shape: f32[64,32], index: 4, kind: output, shape index: {}]  }
   0x1   :  { %v27_v0 = vld [vmem:[%s591_s1] sm:$0xff]  ;;  %v28_v1 = vld [vmem:[%s591_s1 + $0x8] sm:$0xff]  ;;  %v29_v2 = vld [vmem:[%s591_s1 + $0x10] sm:$0xff] }
   0x2   :  { %v420_v3 = vpack.c.bf16 %v28_v1, %v27_v0  ;;  %v30_v4 = vld [vmem:[%s591_s1 + $0x18] sm:$0xff]  ;;  %v476_v5 = vld [vmem:[%s592_s0] sm:$0xff]  ;;  %v174_v8 = vld [vmem:[%s593_s2 + $0x8] sm:$0xff] }
   0x3   :  { %v424_v6 = vpack.c.bf16 %v30_v4, %v29_v2  ;;  %388 = vmatprep.mubr.msk.f32.mxu0 %vm35_vm0, %v476_v5  ;;  %v173_v7 = vld [vmem:[%s593_s2] sm:$0xff]  ;;  %v18_v10 = vld [vmem:[%s592_s0 + $0x8] sm:$0xff]  ;;  %v492_v11 = vld [vmem:[%s592_s0 + $0x10] sm:$0xff] }
   0x4   :  { %421 = vmatprep.subr.bf16.mxu0 %v420_v3  ;;  %v428_v9 = vpack.c.bf16 %v174_v8, %v173_v7  ;;  %v500_v12 = vld [vmem:[%s592_s0 + $0x18] sm:$0xff]  ;;  %v505_v13 = vld [vmem:[%s592_s0 + $0x20] sm:$0xff]  ;;  %v514_v14 = vld [vmem:[%s592_s0 + $0x28] sm:$0xff] }
   0x5   :  { %423 = vmatpush3.bf16.msra.mxu0 %v420_v3  ;;  %v519_v15 = vld [vmem:[%s592_s0 + $0x30] sm:$0xff]  ;;  %v528_v16 = vld [vmem:[%s592_s0 + $0x38] sm:$0xff]  ;;  %v338_v20 = vld [vmem:[%s594_s3] ss:$0 sm:$0xff] }
   0x6   :  { %425 = vmatprep.subr.bf16.mxu0 %v424_v6  ;;  %429 = vmatprep.subr.bf16.mxu1 %v428_v9  ;;  %v175_v17 = vld [vmem:[%s593_s2 + $0x10] sm:$0xff]  ;;  %v176_v18 = vld [vmem:[%s593_s2 + $0x18] sm:$0xff]  ;;  %v347_v45 = vld [vmem:[%s594_s3 + $0x1] ss:$0 sm:$0xff] }
   0x7   :  { %431 = vmatpush3.bf16.msra.mxu1 %v428_v9  ;;  %v432_v19 = vpack.c.bf16 %v176_v18, %v175_v17 }
   0x9   :  { %427 = vmatpush3.bf16.msra.mxu0 %v424_v6  ;;  %433 = vmatprep.subr.bf16.mxu1 %v432_v19 }
   0xb   :  { %435 = vmatpush3.bf16.msra.mxu1 %v432_v19 }
   0xc   :  { %389 = vmatmul.mubr.msk.f32.vlgmr.msra.gmra.mrb[0].mxu0 %vm35_vm0, %v18_v10 }
   0xd   :  { %391 = vmatprep.mubr.msk.f32.mxu0 %vm35_vm0, %v492_v11 }
  0x10   :  { %392 = vmatmul.mubr.msk.f32.gmra.mrb[2].mxu0 %vm35_vm0, %v500_v12 }
  0x11   :  { %394 = vmatprep.mubr.msk.f32.mxu0 %vm35_vm0, %v505_v13 }
  0x14   :  { %395 = vmatmul.mubr.msk.f32.gmra.mrb[4].mxu0 %vm35_vm0, %v514_v14 }
  0x15   :  { %397 = vmatprep.mubr.msk.f32.mxu0 %vm35_vm0, %v519_v15 }
  0x18   :  { %398 = vmatmul.mubr.msk.f32.gmra.mrb[6].mxu0 %vm35_vm0, %v528_v16 }
  0xdf   :  { %v390_v21 = vpop.f32.mrb[0].mxu0 }
  0xe0   :  { %v132_v22 = vadd.f32 %v390_v21, %v338_v20  ;;  %v126_v23 = vpop.f32.mrb[1].mxu0 }
  0xe1   :  { %v127_v24 = vadd.f32 %v338_v20, %v126_v23 }
  0xe2   :  { %v166_v27 = vmax.f32 %v132_v22, 0.0 }
  0xe3   :  { %v165_v25 = vmax.f32 %v127_v24, 0.0  ;;  %v393_v26 = vpop.f32.mrb[2].mxu0 }
  0xe4   :  { %v142_v28 = vadd.f32 %v393_v26, %v338_v20  ;;  %v136_v29 = vpop.f32.mrb[3].mxu0 }
  0xe5   :  { %v137_v30 = vadd.f32 %v338_v20, %v136_v29  ;;  %408 = vmatprep.mubr.msk.f32.mxu1 %vm35_vm0, %v165_v25 }
  0xe6   :  { %409 = vmatmul.mubr.msk.f32.vlgmr.msra.gmra.mrb[0].mxu1 %vm35_vm0, %v166_v27  ;;  %v168_v33 = vmax.f32 %v142_v28, 0.0 }
  0xe7   :  { %v167_v31 = vmax.f32 %v137_v30, 0.0  ;;  %v396_v32 = vpop.f32.mrb[4].mxu0 }
  0xe8   :  { %v152_v34 = vadd.f32 %v396_v32, %v338_v20  ;;  %v146_v35 = vpop.f32.mrb[5].mxu0 }
  0xe9   :  { %v147_v36 = vadd.f32 %v338_v20, %v146_v35  ;;  %411 = vmatprep.mubr.msk.f32.mxu1 %vm35_vm0, %v167_v31 }
  0xea   :  { %412 = vmatmul.mubr.msk.f32.gmra.mrb[2].mxu1 %vm35_vm0, %v168_v33  ;;  %v170_v39 = vmax.f32 %v152_v34, 0.0 }
  0xeb   :  { %v169_v37 = vmax.f32 %v147_v36, 0.0  ;;  %v399_v38 = vpop.f32.mrb[6].mxu0 }
  0xec   :  { %v162_v40 = vadd.f32 %v399_v38, %v338_v20  ;;  %v156_v41 = vpop.f32.mrb[7].mxu0 }
  0xed   :  { %v157_v42 = vadd.f32 %v338_v20, %v156_v41  ;;  %414 = vmatprep.mubr.msk.f32.mxu1 %vm35_vm0, %v169_v37 }
  0xee   :  { %415 = vmatmul.mubr.msk.f32.gmra.mrb[4].mxu1 %vm35_vm0, %v170_v39  ;;  %v172_v44 = vmax.f32 %v162_v40, 0.0 }
  0xef   :  { %v171_v43 = vmax.f32 %v157_v42, 0.0 }
  0xf1   :  { %417 = vmatprep.mubr.msk.f32.mxu1 %vm35_vm0, %v171_v43 }
  0xf2   :  { %418 = vmatmul.mubr.msk.f32.gmra.mrb[6].mxu1 %vm35_vm0, %v172_v44 }
 0x1b9   :  { %v410_v46 = vpop.f32.mrb[0].mxu1 }
 0x1ba   :  { %v277_v47 = vadd.f32 %v410_v46, %v347_v45  ;;  %v271_v48 = vpop.f32.mrb[1].mxu1 }
 0x1bb   :  { %v272_v49 = vadd.f32 %v347_v45, %v271_v48 }
 0x1bc   :  { %v311_v50 = vadd.f32 %v277_v47, %v18_v10 }
 0x1bd   :  { %v310_v51 = vadd.f32 %v272_v49, %v476_v5  ;;  %v413_v52 = vpop.f32.mrb[2].mxu1 }
 0x1be   :  { %v319_v53 = vmax.f32 %v311_v50, 0.0  ;;  %v287_v54 = vadd.f32 %v413_v52, %v347_v45  ;;  %v281_v55 = vpop.f32.mrb[3].mxu1 }
 0x1bf   :  { %v318_v56 = vmax.f32 %v310_v51, 0.0  ;;  %v282_v57 = vadd.f32 %v347_v45, %v281_v55 }
 0x1c0   :  { %327 = vst.msk [vmem:[%s595_s4 + $0x8] sm:$0xff] %vm35_vm0, %v319_v53  ;;  %v313_v58 = vadd.f32 %v287_v54, %v500_v12 }
 0x1c1   :  { %326 = vst.msk [vmem:[%s595_s4] sm:$0xff] %vm35_vm0, %v318_v56  ;;  %v312_v59 = vadd.f32 %v282_v57, %v492_v11  ;;  %v416_v60 = vpop.f32.mrb[4].mxu1 }
 0x1c2   :  { %v321_v61 = vmax.f32 %v313_v58, 0.0  ;;  %v297_v62 = vadd.f32 %v416_v60, %v347_v45  ;;  %v291_v63 = vpop.f32.mrb[5].mxu1 }
 0x1c3   :  { %v320_v0 = vmax.f32 %v312_v59, 0.0  ;;  %v292_v1 = vadd.f32 %v347_v45, %v291_v63 }
 0x1c4   :  { %329 = vst.msk [vmem:[%s595_s4 + $0x18] sm:$0xff] %vm35_vm0, %v321_v61  ;;  %v315_v2 = vadd.f32 %v297_v62, %v514_v14 }
 0x1c5   :  { %328 = vst.msk [vmem:[%s595_s4 + $0x10] sm:$0xff] %vm35_vm0, %v320_v0  ;;  %v314_v3 = vadd.f32 %v292_v1, %v505_v13  ;;  %v419_v4 = vpop.f32.mrb[6].mxu1 }
 0x1c6   :  { %v323_v5 = vmax.f32 %v315_v2, 0.0  ;;  %v307_v6 = vadd.f32 %v419_v4, %v347_v45  ;;  %v301_v7 = vpop.f32.mrb[7].mxu1 }
 0x1c7   :  { %v322_v8 = vmax.f32 %v314_v3, 0.0  ;;  %v302_v9 = vadd.f32 %v347_v45, %v301_v7 }
 0x1c8   :  { %331 = vst.msk [vmem:[%s595_s4 + $0x28] sm:$0xff] %vm35_vm0, %v323_v5  ;;  %v317_v10 = vadd.f32 %v307_v6, %v528_v16 }
 0x1c9   :  { %330 = vst.msk [vmem:[%s595_s4 + $0x20] sm:$0xff] %vm35_vm0, %v322_v8  ;;  %v316_v11 = vadd.f32 %v302_v9, %v519_v15 }
 0x1ca   :  { %v325_v12 = vmax.f32 %v317_v10, 0.0 }
 0x1cb   :  { %v324_v13 = vmax.f32 %v316_v11, 0.0 }
 0x1cc   :  { %333 = vst.msk [vmem:[%s595_s4 + $0x38] sm:$0xff] %vm35_vm0, %v325_v12 }
 0x1cd   :  { %332 = vst.msk [vmem:[%s595_s4 + $0x30] sm:$0xff] %vm35_vm0, %v324_v13 }

// kernel: tpu_custom_call.1
= control target key start
LH: loop header
LB: loop body
LE: loop exit
PB: predicated region body
PF: predicated region fallthrough
CT: control target
= control target key end

     0   :  { %vm35_vm0 = vcmask 261120   ;;  %s591_s1 = inlined_call_operand.vmem [shape: f32[32,32], index: 1, kind: input, shape index: {}]   ;;  %s592_s0 = inlined_call_operand.vmem [shape: f32[64,32], index: 0, kind: input, shape index: {}]   ;;  %s593_s2 = inlined_call_operand.vmem [shape: f32[32,32], index: 2, kind: input, shape index: {}]   ;;  %s594_s3 = inlined_call_operand.vmem [shape: f32[2,32], index: 3, kind: input, shape index: {}]   ;;  %s595_s4 = inlined_call_operand.vmem [shape: f32[64,32], index: 4, kind: output, shape index: {}]  }
   0x1   :  { %v27_v0 = vld [vmem:[%s591_s1] sm:$0xff]  ;;  %v28_v1 = vld [vmem:[%s591_s1 + $0x8] sm:$0xff]  ;;  %v29_v2 = vld [vmem:[%s591_s1 + $0x10] sm:$0xff] }
   0x2   :  { %v420_v3 = vpack.c.bf16 %v28_v1, %v27_v0  ;;  %v30_v4 = vld [vmem:[%s591_s1 + $0x18] sm:$0xff]  ;;  %v476_v5 = vld [vmem:[%s592_s0] sm:$0xff]  ;;  %v174_v8 = vld [vmem:[%s593_s2 + $0x8] sm:$0xff] }
   0x3   :  { %v424_v6 = vpack.c.bf16 %v30_v4, %v29_v2  ;;  %388 = vmatprep.mubr.msk.f32.mxu0 %vm35_vm0, %v476_v5  ;;  %v173_v7 = vld [vmem:[%s593_s2] sm:$0xff]  ;;  %v18_v10 = vld [vmem:[%s592_s0 + $0x8] sm:$0xff]  ;;  %v492_v11 = vld [vmem:[%s592_s0 + $0x10] sm:$0xff] }
   0x4   :  { %421 = vmatprep.subr.bf16.mxu0 %v420_v3  ;;  %v428_v9 = vpack.c.bf16 %v174_v8, %v173_v7  ;;  %v500_v12 = vld [vmem:[%s592_s0 + $0x18] sm:$0xff]  ;;  %v505_v13 = vld [vmem:[%s592_s0 + $0x20] sm:$0xff]  ;;  %v514_v14 = vld [vmem:[%s592_s0 + $0x28] sm:$0xff] }
   0x5   :  { %423 = vmatpush3.bf16.msra.mxu0 %v420_v3  ;;  %v519_v15 = vld [vmem:[%s592_s0 + $0x30] sm:$0xff]  ;;  %v528_v16 = vld [vmem:[%s592_s0 + $0x38] sm:$0xff]  ;;  %v338_v20 = vld [vmem:[%s594_s3] ss:$0 sm:$0xff] }
   0x6   :  { %425 = vmatprep.subr.bf16.mxu0 %v424_v6  ;;  %429 = vmatprep.subr.bf16.mxu1 %v428_v9  ;;  %v175_v17 = vld [vmem:[%s593_s2 + $0x10] sm:$0xff]  ;;  %v176_v18 = vld [vmem:[%s593_s2 + $0x18] sm:$0xff]  ;;  %v347_v45 = vld [vmem:[%s594_s3 + $0x1] ss:$0 sm:$0xff] }
   0x7   :  { %431 = vmatpush3.bf16.msra.mxu1 %v428_v9  ;;  %v432_v19 = vpack.c.bf16 %v176_v18, %v175_v17 }
   0x9   :  { %427 = vmatpush3.bf16.msra.mxu0 %v424_v6  ;;  %433 = vmatprep.subr.bf16.mxu1 %v432_v19 }
   0xb   :  { %435 = vmatpush3.bf16.msra.mxu1 %v432_v19 }
   0xc   :  { %389 = vmatmul.mubr.msk.f32.vlgmr.msra.gmra.mrb[0].mxu0 %vm35_vm0, %v18_v10 }
   0xd   :  { %391 = vmatprep.mubr.msk.f32.mxu0 %vm35_vm0, %v492_v11 }
  0x10   :  { %392 = vmatmul.mubr.msk.f32.gmra.mrb[2].mxu0 %vm35_vm0, %v500_v12 }
  0x11   :  { %394 = vmatprep.mubr.msk.f32.mxu0 %vm35_vm0, %v505_v13 }
  0x14   :  { %395 = vmatmul.mubr.msk.f32.gmra.mrb[4].mxu0 %vm35_vm0, %v514_v14 }
  0x15   :  { %397 = vmatprep.mubr.msk.f32.mxu0 %vm35_vm0, %v519_v15 }
  0x18   :  { %398 = vmatmul.mubr.msk.f32.gmra.mrb[6].mxu0 %vm35_vm0, %v528_v16 }
  0xdf   :  { %v390_v21 = vpop.f32.mrb[0].mxu0 }
  0xe0   :  { %v132_v22 = vadd.f32 %v390_v21, %v338_v20  ;;  %v126_v23 = vpop.f32.mrb[1].mxu0 }
  0xe1   :  { %v127_v24 = vadd.f32 %v338_v20, %v126_v23 }
  0xe2   :  { %v166_v27 = vmax.f32 %v132_v22, 0.0 }
  0xe3   :  { %v165_v25 = vmax.f32 %v127_v24, 0.0  ;;  %v393_v26 = vpop.f32.mrb[2].mxu0 }
  0xe4   :  { %v142_v28 = vadd.f32 %v393_v26, %v338_v20  ;;  %v136_v29 = vpop.f32.mrb[3].mxu0 }
  0xe5   :  { %v137_v30 = vadd.f32 %v338_v20, %v136_v29  ;;  %408 = vmatprep.mubr.msk.f32.mxu1 %vm35_vm0, %v165_v25 }
  0xe6   :  { %409 = vmatmul.mubr.msk.f32.vlgmr.msra.gmra.mrb[0].mxu1 %vm35_vm0, %v166_v27  ;;  %v168_v33 = vmax.f32 %v142_v28, 0.0 }
  0xe7   :  { %v167_v31 = vmax.f32 %v137_v30, 0.0  ;;  %v396_v32 = vpop.f32.mrb[4].mxu0 }
  0xe8   :  { %v152_v34 = vadd.f32 %v396_v32, %v338_v20  ;;  %v146_v35 = vpop.f32.mrb[5].mxu0 }
  0xe9   :  { %v147_v36 = vadd.f32 %v338_v20, %v146_v35  ;;  %411 = vmatprep.mubr.msk.f32.mxu1 %vm35_vm0, %v167_v31 }
  0xea   :  { %412 = vmatmul.mubr.msk.f32.gmra.mrb[2].mxu1 %vm35_vm0, %v168_v33  ;;  %v170_v39 = vmax.f32 %v152_v34, 0.0 }
  0xeb   :  { %v169_v37 = vmax.f32 %v147_v36, 0.0  ;;  %v399_v38 = vpop.f32.mrb[6].mxu0 }
  0xec   :  { %v162_v40 = vadd.f32 %v399_v38, %v338_v20  ;;  %v156_v41 = vpop.f32.mrb[7].mxu0 }
  0xed   :  { %v157_v42 = vadd.f32 %v338_v20, %v156_v41  ;;  %414 = vmatprep.mubr.msk.f32.mxu1 %vm35_vm0, %v169_v37 }
  0xee   :  { %415 = vmatmul.mubr.msk.f32.gmra.mrb[4].mxu1 %vm35_vm0, %v170_v39  ;;  %v172_v44 = vmax.f32 %v162_v40, 0.0 }
  0xef   :  { %v171_v43 = vmax.f32 %v157_v42, 0.0 }
  0xf1   :  { %417 = vmatprep.mubr.msk.f32.mxu1 %vm35_vm0, %v171_v43 }
  0xf2   :  { %418 = vmatmul.mubr.msk.f32.gmra.mrb[6].mxu1 %vm35_vm0, %v172_v44 }
 0x1b9   :  { %v410_v46 = vpop.f32.mrb[0].mxu1 }
 0x1ba   :  { %v277_v47 = vadd.f32 %v410_v46, %v347_v45  ;;  %v271_v48 = vpop.f32.mrb[1].mxu1 }
 0x1bb   :  { %v272_v49 = vadd.f32 %v347_v45, %v271_v48 }
 0x1bc   :  { %v311_v50 = vadd.f32 %v277_v47, %v18_v10 }
 0x1bd   :  { %v310_v51 = vadd.f32 %v272_v49, %v476_v5  ;;  %v413_v52 = vpop.f32.mrb[2].mxu1 }
 0x1be   :  { %v319_v53 = vmax.f32 %v311_v50, 0.0  ;;  %v287_v54 = vadd.f32 %v413_v52, %v347_v45  ;;  %v281_v55 = vpop.f32.mrb[3].mxu1 }
 0x1bf   :  { %v318_v56 = vmax.f32 %v310_v51, 0.0  ;;  %v282_v57 = vadd.f32 %v347_v45, %v281_v55 }
 0x1c0   :  { %327 = vst.msk [vmem:[%s595_s4 + $0x8] sm:$0xff] %vm35_vm0, %v319_v53  ;;  %v313_v58 = vadd.f32 %v287_v54, %v500_v12 }
 0x1c1   :  { %326 = vst.msk [vmem:[%s595_s4] sm:$0xff] %vm35_vm0, %v318_v56  ;;  %v312_v59 = vadd.f32 %v282_v57, %v492_v11  ;;  %v416_v60 = vpop.f32.mrb[4].mxu1 }
 0x1c2   :  { %v321_v61 = vmax.f32 %v313_v58, 0.0  ;;  %v297_v62 = vadd.f32 %v416_v60, %v347_v45  ;;  %v291_v63 = vpop.f32.mrb[5].mxu1 }
 0x1c3   :  { %v320_v0 = vmax.f32 %v312_v59, 0.0  ;;  %v292_v1 = vadd.f32 %v347_v45, %v291_v63 }
 0x1c4   :  { %329 = vst.msk [vmem:[%s595_s4 + $0x18] sm:$0xff] %vm35_vm0, %v321_v61  ;;  %v315_v2 = vadd.f32 %v297_v62, %v514_v14 }
 0x1c5   :  { %328 = vst.msk [vmem:[%s595_s4 + $0x10] sm:$0xff] %vm35_vm0, %v320_v0  ;;  %v314_v3 = vadd.f32 %v292_v1, %v505_v13  ;;  %v419_v4 = vpop.f32.mrb[6].mxu1 }
 0x1c6   :  { %v323_v5 = vmax.f32 %v315_v2, 0.0  ;;  %v307_v6 = vadd.f32 %v419_v4, %v347_v45  ;;  %v301_v7 = vpop.f32.mrb[7].mxu1 }
 0x1c7   :  { %v322_v8 = vmax.f32 %v314_v3, 0.0  ;;  %v302_v9 = vadd.f32 %v347_v45, %v301_v7 }
 0x1c8   :  { %331 = vst.msk [vmem:[%s595_s4 + $0x28] sm:$0xff] %vm35_vm0, %v323_v5  ;;  %v317_v10 = vadd.f32 %v307_v6, %v528_v16 }
 0x1c9   :  { %330 = vst.msk [vmem:[%s595_s4 + $0x20] sm:$0xff] %vm35_vm0, %v322_v8  ;;  %v316_v11 = vadd.f32 %v302_v9, %v519_v15 }
 0x1ca   :  { %v325_v12 = vmax.f32 %v317_v10, 0.0 }
 0x1cb   :  { %v324_v13 = vmax.f32 %v316_v11, 0.0 }
 0x1cc   :  { %333 = vst.msk [vmem:[%s595_s4 + $0x38] sm:$0xff] %vm35_vm0, %v325_v12 }
 0x1cd   :  { %332 = vst.msk [vmem:[%s595_s4 + $0x30] sm:$0xff] %vm35_vm0, %v324_v13 }

</bundles_post_ra>
